<compile_context>
chip_gen: v5e
topology: v5e:2x2
jax: 0.10.0
libtpu: 0.0.40
codegen_flags: <defaults>
</compile_context>

<pallas_src>
import jax
import jax.numpy as jnp
from jax.experimental import pallas as pl
from jax.experimental.pallas import tpu as pltpu

P_ENC = 3  # number of positional channels (time, row, col)


def make_positional_encoding(T, H, W) -> jnp.ndarray:
    """JAX port of the torch buffer: shape (T, H, W, 3), float32."""
    t_coord = jnp.linspace(0.0, 1.0, T, dtype=jnp.float32)
    row_coord = jnp.linspace(0.0, 1.0, H, dtype=jnp.float32)
    col_coord = jnp.linspace(0.0, 1.0, W, dtype=jnp.float32)
    time_enc = jnp.broadcast_to(t_coord[:, None, None], (T, H, W))
    row_enc = jnp.broadcast_to(row_coord[None, :, None], (T, H, W))
    col_enc = jnp.broadcast_to(col_coord[None, None, :], (T, H, W))
    return jnp.stack([time_enc, row_enc, col_enc], axis=-1)


def _concat_kernel(t_ref, enc_ref, x_ref, out_ref):
    # t_ref   : SMEM (1,) int32          -- scalar-prefetch time offset
    # enc_ref : VMEM (T_enc, Hp, Wp, P)  -- whole buffer, resident once
    # x_ref   : VMEM (1, Tp, Hp, Wp, C)  -- x[b]
    # out_ref : VMEM (1, Tp, Hp, Wp, C+P)
    Tp = x_ref.shape[1]
    enc = enc_ref[pl.ds(t_ref[0], Tp)]                      # encoding[t : t+Tp]
    merged = jnp.concatenate(
        [enc.astype(out_ref.dtype), x_ref[0]], axis=-1)      # (Tp, Hp, Wp, C+P)
    out_ref[0] = merged                                      # single full-tile store


class PositionalEncoding:
    """Pallas-backed equivalent of the torch module."""

    def __init__(self, Tp, Hp, Wp):
        self.encoding = make_positional_encoding(Tp, Hp, Wp)  # (Tp, Hp, Wp, 3)

    def __call__(self, x: jnp.ndarray, t: int) -> jnp.ndarray:
        B, Tp, Hp, Wp, C = x.shape
        T_enc = self.encoding.shape[0]

        # Guard against an out-of-range time slice (in-kernel VMEM reads are
        # not bounds-checked).  Python-level check for concrete ints, plus a
        # defensive clamp for traced values.
        if isinstance(t, int) and not (0 <= t and t + Tp <= T_enc):
            raise ValueError(
                f"time slice [{t}, {t + Tp}) out of range for encoding buffer "
                f"of length {T_enc}")
        t_arr = jnp.clip(jnp.asarray([t], dtype=jnp.int32), 0, T_enc - Tp)

        out_shape = jax.ShapeDtypeStruct((B, Tp, Hp, Wp, C + P_ENC), x.dtype)

        # VMEM budget per grid step (double-buffered x/out + resident enc) is
        # tiny at these sizes; for very large Tp*Hp*Wp*C split Tp into a second
        # ("arbitrary") grid axis or set vmem_limit_bytes explicitly (v7x has
        # 64 MiB physical VMEM).
        grid_spec = pltpu.PrefetchScalarGridSpec(
            num_scalar_prefetch=1,
            grid=(B,),
            in_specs=[
                # Whole encoding buffer, untiled & resident in VMEM
                # (fetched once, not per grid step).
                pl.BlockSpec(memory_space=pltpu.MemorySpace.VMEM),
                # x[b]: one (Tp, Hp, Wp, C) slab per grid step.
                pl.BlockSpec((1, Tp, Hp, Wp, C),
                             lambda b, t_ref: (b, 0, 0, 0, 0)),
            ],
            out_specs=pl.BlockSpec((1, Tp, Hp, Wp, C + P_ENC),
                                   lambda b, t_ref: (b, 0, 0, 0, 0)),
        )

        return pl.pallas_call(
            _concat_kernel,
            out_shape=out_shape,
            grid_spec=grid_spec,
            compiler_params=pltpu.CompilerParams(
                dimension_semantics=("parallel",)),
        )(t_arr, self.encoding, x)


def _reference(encoding, x, t):
    B, Tp = x.shape[0], x.shape[1]
    enc = encoding[t:t + Tp][None]                       # (1, Tp, Hp, Wp, 3)
    enc = jnp.broadcast_to(enc, (B,) + enc.shape[1:])    # (B, Tp, Hp, Wp, 3)
    return jnp.concatenate([enc.astype(x.dtype), x], axis=-1)


if __name__ == "__main__":
    # Module built with a buffer long enough for the slice encoding[t:t+Tp].
    T_buf, Hp, Wp = 12, 8, 16
    B, Tp, C = 2, 8, 4
    t = 2

    module = PositionalEncoding(T_buf, Hp, Wp)

    key = jax.random.PRNGKey(0)
    x = jax.random.normal(key, (B, Tp, Hp, Wp, C), dtype=jnp.float32)

    out = module(x, t)
    out = jax.block_until_ready(out)

    ref = _reference(module.encoding, x, t)
    assert out.shape == (B, Tp, Hp, Wp, C + P_ENC), out.shape
    assert out.dtype == x.dtype
    assert jnp.allclose(out, ref, atol=0.0, rtol=0.0), "mismatch vs reference"

    print("KERNEL_OK")
</pallas_src>

<mosaic_0001>
module attributes {stable_mosaic.version = 11 : i64} {
  func.func @_concat_kernel(%arg0: i32, %arg1: memref<1xi32, #tpu.memory_space<smem>>, %arg2: memref<12x8x16x3xf32, #tpu.memory_space<vmem>>, %arg3: memref<1x8x8x16x4xf32, #tpu.memory_space<vmem>>, %arg4: memref<1x8x8x16x7xf32, #tpu.memory_space<vmem>>) attributes {dimension_semantics = [#tpu.dimension_semantics<parallel>], iteration_bounds = array<i64: 2>, scalar_prefetch = 1 : i64, scratch_operands = 0 : i64, tpu.core_type = #tpu.core_type<tc>, window_params = [{pipeline_mode = #tpu.pipeline_mode<synchronous>, transform_indices = @transform_0, window_bounds = array<i64: 12, 8, 16, 3>}, {transform_indices = @transform_1, window_bounds = array<i64: 1, 8, 8, 16, 4>}, {transform_indices = @transform_2, window_bounds = array<i64: 1, 8, 8, 16, 7>}]} {
    %c0 = arith.constant 0 : index
    %0 = memref.load %arg1[%c0] : memref<1xi32, #tpu.memory_space<smem>>
    %1 = arith.index_cast %0 : i32 to index
    %c0_0 = arith.constant 0 : index
    %c0_1 = arith.constant 0 : index
    %c0_2 = arith.constant 0 : index
    %2 = vector.load %arg2[%1, %c0_0, %c0_1, %c0_2] : memref<12x8x16x3xf32, #tpu.memory_space<vmem>>, vector<8x8x16x3xf32>
    %c0_3 = arith.constant 0 : index
    %c0_4 = arith.constant 0 : index
    %c0_5 = arith.constant 0 : index
    %c0_6 = arith.constant 0 : index
    %c0_7 = arith.constant 0 : index
    %3 = vector.load %arg3[%c0_3, %c0_4, %c0_5, %c0_6, %c0_7] : memref<1x8x8x16x4xf32, #tpu.memory_space<vmem>>, vector<1x8x8x16x4xf32>
    %4 = vector.shape_cast %3 : vector<1x8x8x16x4xf32> to vector<8x8x16x4xf32>
    %5 = tpu.concatenate %2, %4 in 3 : vector<8x8x16x3xf32>, vector<8x8x16x4xf32> -> vector<8x8x16x7xf32>
    %c0_8 = arith.constant 0 : index
    %c0_9 = arith.constant 0 : index
    %c0_10 = arith.constant 0 : index
    %c0_11 = arith.constant 0 : index
    %c0_12 = arith.constant 0 : index
    %6 = vector.load %arg4[%c0_8, %c0_9, %c0_10, %c0_11, %c0_12] : memref<1x8x8x16x7xf32, #tpu.memory_space<vmem>>, vector<1x8x8x16x7xf32>
    %7 = vector.shape_cast %6 : vector<1x8x8x16x7xf32> to vector<8x8x16x7xf32>
    %8 = vector.shape_cast %5 : vector<8x8x16x7xf32> to vector<1x8x8x16x7xf32>
    tpu.vector_store %arg4[%c0_8, %c0_9, %c0_10, %c0_11, %c0_12], %8 {strides = array<i32>} : memref<1x8x8x16x7xf32, #tpu.memory_space<vmem>>, vector<1x8x8x16x7xf32>,
    return
  }
  func.func @transform_0(%arg0: i32, %arg1: memref<1xi32, #tpu.memory_space<smem>>) -> (i32, i32, i32, i32) {
    %c0_i32 = arith.constant 0 : i32
    %c0_i32_0 = arith.constant 0 : i32
    %c0_i32_1 = arith.constant 0 : i32
    %c0_i32_2 = arith.constant 0 : i32
    %c0_i32_3 = arith.constant 0 : i32
    return %c0_i32, %c0_i32_0, %c0_i32_1, %c0_i32_2 : i32, i32, i32, i32
  }
  func.func @transform_1(%arg0: i32, %arg1: memref<1xi32, #tpu.memory_space<smem>>) -> (i32, i32, i32, i32, i32) {
    %c0_i32 = arith.constant 0 : i32
    %c0_i32_0 = arith.constant 0 : i32
    %c0_i32_1 = arith.constant 0 : i32
    %c0_i32_2 = arith.constant 0 : i32
    %c0_i32_3 = arith.constant 0 : i32
    return %arg0, %c0_i32, %c0_i32_0, %c0_i32_1, %c0_i32_2 : i32, i32, i32, i32, i32
  }
  func.func @transform_2(%arg0: i32, %arg1: memref<1xi32, #tpu.memory_space<smem>>) -> (i32, i32, i32, i32, i32) {
    %c0_i32 = arith.constant 0 : i32
    %c0_i32_0 = arith.constant 0 : i32
    %c0_i32_1 = arith.constant 0 : i32
    %c0_i32_2 = arith.constant 0 : i32
    %c0_i32_3 = arith.constant 0 : i32
    return %arg0, %c0_i32, %c0_i32_0, %c0_i32_1, %c0_i32_2 : i32, i32, i32, i32, i32
  }
}

</mosaic_0001>

<bundles_post_ra>
// kernel: tpu_custom_call.1
= control target key start
LH: loop header
LB: loop body
LE: loop exit
PB: predicated region body
PF: predicated region fallthrough
CT: control target
= control target key end

     0   :  { %s1287_s14 = smov 0   ;;  %s2088_s0 = inlined_call_operand.<no memory space> [shape: s32[1], index: 0, kind: input, shape index: {}]   ;;  %s2089_s1 = inlined_call_operand.vmem [shape: f32[12,8,16,3], index: 1, kind: input, shape index: {}]   ;;  %s2090_s2 = inlined_call_operand.vmem [shape: f32[2,8,8,16,4], index: 2, kind: input, shape index: {}]   ;;  %s2091_s3 = inlined_call_operand.vmem [shape: f32[2,8,8,16,7], index: 3, kind: output, shape index: {}]  }
   0x1   :  { %8 = sst [smem:[#allocation3]] %s2088_s0 }
   0x2 LB: > { %s1232_s15 = sadd.s32 4294967295, %s1261_s14   ;;  %p1236_p0 = scmp.ge.s32.totalorder %s1261_s14, 1  ;;  %s1261_s14 = sphi %s1287_s14, %s14_s14  }
   0x3   : > { %p114_p1 = scmp.lt.s32.totalorder %s1261_s14, 3 }
   0x5   : > { %p115_p2 = pnand %p1236_p0, %p114_p1 }
   0x6   : > { %p136_p3 = scmp.lt.s32.totalorder (!%p115_p2), %s1232_s15, 1  ;;  %s1263_s19 = smov (!%p115_p2), 3  }
   0x7   : > { %118 = sbr.rel (%p115_p2) target bundleno = 470 (0x1d6), region = 28  ;;  %s146_s20 = sld [smem:[#allocation3]] (!%p115_p2) }
   0xc   : > { %s2093_s15 = smov (!%p136_p3, %s1232_s15), 1  ;;  %vm917_vm0 = vcmask 23552   ;;  %vm1046_vm1 = vcmask 56320  }
   0xd   : > { %s1244_s0 = sshll.u32 %s2093_s15, 10  ;;  %s1241_s21 = sshll.u32 %s146_s20, 7 }
   0xe   : > { %s1303_s18 = scalar_lea.vmem %s2090_s2, %s1244_s0  ;;  %s1379_s24 = scalar_lea.vmem %s2089_s1, %s1241_s21 }
   0xf   : > { %v279_v0 = vld [vmem:[%s1303_s18 + $0x10] sm:$0xff]  ;;  %v277_v1 = vld [vmem:[%s1303_s18] sm:$0xff]  ;;  %v280_v3 = vld [vmem:[%s1303_s18 + $0x18] sm:$0xff]  ;;  %s1390_s27 = scalar_lea.vmem %s2091_s3, %s1244_s0 }
  0x10   : > { %537 = vrot.lane.b32.xlu1 %v279_v0, %s1263_s19  ;;  %533 = vrot.lane.b32.xlu0 %v277_v1, %s1263_s19  ;;  %v281_v2 = vld [vmem:[%s1303_s18 + $0x20] sm:$0xff]  ;;  %v278_v4 = vld [vmem:[%s1303_s18 + $0x8] sm:$0xff] }
  0x11   : > { %541 = vrot.lane.b32.xlu2 %v281_v2, %s1263_s19  ;;  %v282_v5 = vld [vmem:[%s1303_s18 + $0x28] sm:$0xff]  ;;  %v284_v6 = vld [vmem:[%s1303_s18 + $0x38] sm:$0xff]  ;;  %v283_v7 = vld [vmem:[%s1303_s18 + $0x30] sm:$0xff] }
  0x12   : > { %v285_v8 = vld [vmem:[%s1303_s18 + $0x40] sm:$0xff]  ;;  %v287_v9 = vld [vmem:[%s1303_s18 + $0x50] sm:$0xff]  ;;  %v286_v10 = vld [vmem:[%s1303_s18 + $0x48] sm:$0xff] }
  0x13   : > { %v288_v11 = vld [vmem:[%s1303_s18 + $0x58] sm:$0xff]  ;;  %v290_v12 = vld [vmem:[%s1303_s18 + $0x68] sm:$0xff]  ;;  %v289_v13 = vld [vmem:[%s1303_s18 + $0x60] sm:$0xff] }
  0x14   : > { %v291_v14 = vld [vmem:[%s1303_s18 + $0x70] sm:$0xff]  ;;  %v293_v15 = vld [vmem:[%s1303_s18 + $0x80] sm:$0xff]  ;;  %v292_v16 = vld [vmem:[%s1303_s18 + $0x78] sm:$0xff] }
  0x15   : > { %v294_v17 = vld [vmem:[%s1303_s18 + $0x88] sm:$0xff]  ;;  %v296_v18 = vld [vmem:[%s1303_s18 + $0x98] sm:$0xff]  ;;  %v295_v19 = vld [vmem:[%s1303_s18 + $0x90] sm:$0xff] }
  0x16   : > { %v297_v20 = vld [vmem:[%s1303_s18 + $0xa0] sm:$0xff]  ;;  %v299_v21 = vld [vmem:[%s1303_s18 + $0xb0] sm:$0xff]  ;;  %v298_v22 = vld [vmem:[%s1303_s18 + $0xa8] sm:$0xff] }
  0x17   : > { %v300_v23 = vld [vmem:[%s1303_s18 + $0xb8] sm:$0xff]  ;;  %v302_v24 = vld [vmem:[%s1303_s18 + $0xc8] sm:$0xff]  ;;  %v301_v25 = vld [vmem:[%s1303_s18 + $0xc0] sm:$0xff] }
  0x18   : > { %539 = vrot.lane.b32.xlu1 %v280_v3, %s1263_s19  ;;  %535 = vrot.lane.b32.xlu0 %v278_v4, %s1263_s19  ;;  %v303_v26 = vld [vmem:[%s1303_s18 + $0xd0] sm:$0xff]  ;;  %v305_v27 = vld [vmem:[%s1303_s18 + $0xe0] sm:$0xff] }
  0x19   : > { %543 = vrot.lane.b32.xlu2 %v282_v5, %s1263_s19  ;;  %v304_v28 = vld [vmem:[%s1303_s18 + $0xd8] sm:$0xff]  ;;  %v306_v29 = vld [vmem:[%s1303_s18 + $0xe8] sm:$0xff]  ;;  %v307_v31 = vld [vmem:[%s1303_s18 + $0xf0] sm:$0xff] }
  0x1a   : > { %v308_v30 = vld [vmem:[%s1303_s18 + $0xf8] sm:$0xff]  ;;  %v309_v32 = vld [vmem:[%s1303_s18 + $0x100] sm:$0xff]  ;;  %v311_v33 = vld [vmem:[%s1303_s18 + $0x110] sm:$0xff] }
  0x1b   : > { %v310_v34 = vld [vmem:[%s1303_s18 + $0x108] sm:$0xff]  ;;  %v312_v35 = vld [vmem:[%s1303_s18 + $0x118] sm:$0xff]  ;;  %v153_v36 = vld [vmem:[%s1379_s24 + $0x20] sm:$0xff] }
  0x1c   : > { %v314_v37 = vld [vmem:[%s1303_s18 + $0x128] sm:$0xff]  ;;  %v313_v38 = vld [vmem:[%s1303_s18 + $0x120] sm:$0xff]  ;;  %v315_v41 = vld [vmem:[%s1303_s18 + $0x130] sm:$0xff] }
  0x1d   : > { %v154_v42 = vld [vmem:[%s1379_s24 + $0x28] sm:$0xff]  ;;  %v317_v43 = vld [vmem:[%s1303_s18 + $0x140] sm:$0xff]  ;;  %v316_v44 = vld [vmem:[%s1303_s18 + $0x138] sm:$0xff] }
  0x1e   : > { %v318_v47 = vld [vmem:[%s1303_s18 + $0x148] sm:$0xff]  ;;  %v157_v48 = vld [vmem:[%s1379_s24 + $0x40] sm:$0xff]  ;;  %v320_v49 = vld [vmem:[%s1303_s18 + $0x158] sm:$0xff] }
  0x1f   : > { %v319_v50 = vld [vmem:[%s1303_s18 + $0x150] sm:$0xff]  ;;  %v149_v54 = vld [vmem:[%s1379_s24] sm:$0xff]  ;;  %v160_v60 = vld [vmem:[%s1379_s24 + $0x58] sm:$0xff] }
  0x20   : > { %547 = vrot.lane.b32.xlu1 %v284_v6, %s1263_s19  ;;  %545 = vrot.lane.b32.xlu0 %v283_v7, %s1263_s19  ;;  %v151_v53 = vld [vmem:[%s1379_s24 + $0x10] sm:$0xff]  ;;  %v321_v55 = vld [vmem:[%s1303_s18 + $0x160] sm:$0xff] }
  0x21   : > { %549 = vrot.lane.b32.xlu2 %v285_v8, %s1263_s19  ;;  %v323_v61 = vld [vmem:[%s1303_s18 + $0x170] sm:$0xff]  ;;  %v322_v62 = vld [vmem:[%s1303_s18 + $0x168] sm:$0xff]  ;;  %v152_v1 = vld [vmem:[%s1379_s24 + $0x18] sm:$0xff] }
  0x22   : > { %v150_v2 = vld [vmem:[%s1379_s24 + $0x8] sm:$0xff]  ;;  %v324_v3 = vld [vmem:[%s1303_s18 + $0x178] sm:$0xff]  ;;  %v163_v8 = vld [vmem:[%s1379_s24 + $0x70] sm:$0xff] }
  0x28   : > { %553 = vrot.lane.b32.xlu1 %v287_v9, %s1263_s19  ;;  %551 = vrot.lane.b32.xlu0 %v286_v10, %s1263_s19  ;;  %v326_v9 = vld [vmem:[%s1303_s18 + $0x188] sm:$0xff]  ;;  %v325_v10 = vld [vmem:[%s1303_s18 + $0x180] sm:$0xff] }
  0x29   : > { %555 = vrot.lane.b32.xlu2 %v288_v11, %s1263_s19 }
  0x30   : > { %559 = vrot.lane.b32.xlu1 %v290_v12, %s1263_s19  ;;  %557 = vrot.lane.b32.xlu0 %v289_v13, %s1263_s19  ;;  %v156_v13 = vld [vmem:[%s1379_s24 + $0x38] sm:$0xff] }
  0x31   : > { %561 = vrot.lane.b32.xlu2 %v291_v14, %s1263_s19  ;;  %v155_v14 = vld [vmem:[%s1379_s24 + $0x30] sm:$0xff] }
  0x38   : > { %565 = vrot.lane.b32.xlu1 %v293_v15, %s1263_s19  ;;  %563 = vrot.lane.b32.xlu0 %v292_v16, %s1263_s19  ;;  %v327_v15 = vld [vmem:[%s1303_s18 + $0x190] sm:$0xff] }
  0x39   : > { %567 = vrot.lane.b32.xlu2 %v294_v17, %s1263_s19 }
  0x40   : > { %571 = vrot.lane.b32.xlu1 %v296_v18, %s1263_s19  ;;  %569 = vrot.lane.b32.xlu0 %v295_v19, %s1263_s19 }
  0x41   : > { %573 = vrot.lane.b32.xlu2 %v297_v20, %s1263_s19  ;;  %v166_v20 = vld [vmem:[%s1379_s24 + $0x88] sm:$0xff] }
  0x48   : > { %577 = vrot.lane.b32.xlu1 %v299_v21, %s1263_s19  ;;  %575 = vrot.lane.b32.xlu0 %v298_v22, %s1263_s19  ;;  %v329_v21 = vld [vmem:[%s1303_s18 + $0x1a0] sm:$0xff]  ;;  %v328_v22 = vld [vmem:[%s1303_s18 + $0x198] sm:$0xff] }
  0x49   : > { %579 = vrot.lane.b32.xlu2 %v300_v23, %s1263_s19 }
  0x50   : > { %583 = vrot.lane.b32.xlu1 %v302_v24, %s1263_s19  ;;  %581 = vrot.lane.b32.xlu0 %v301_v25, %s1263_s19  ;;  %v159_v25 = vld [vmem:[%s1379_s24 + $0x50] sm:$0xff] }
  0x51   : > { %585 = vrot.lane.b32.xlu2 %v303_v26, %s1263_s19  ;;  %v158_v26 = vld [vmem:[%s1379_s24 + $0x48] sm:$0xff] }
  0x58   : > { %589 = vrot.lane.b32.xlu1 %v305_v27, %s1263_s19  ;;  %587 = vrot.lane.b32.xlu0 %v304_v28, %s1263_s19  ;;  %v330_v27 = vld [vmem:[%s1303_s18 + $0x1a8] sm:$0xff] }
  0x59   : > { %591 = vrot.lane.b32.xlu2 %v306_v29, %s1263_s19 }
  0x60   : > { %595 = vrot.lane.b32.xlu1 %v308_v30, %s1263_s19  ;;  %593 = vrot.lane.b32.xlu0 %v307_v31, %s1263_s19 }
  0x61   : > { %597 = vrot.lane.b32.xlu2 %v309_v32, %s1263_s19  ;;  %v169_v32 = vld [vmem:[%s1379_s24 + $0xa0] sm:$0xff] }
  0x68   : > { %601 = vrot.lane.b32.xlu1 %v311_v33, %s1263_s19  ;;  %599 = vrot.lane.b32.xlu0 %v310_v34, %s1263_s19  ;;  %v332_v33 = vld [vmem:[%s1303_s18 + $0x1b8] sm:$0xff]  ;;  %v331_v34 = vld [vmem:[%s1303_s18 + $0x1b0] sm:$0xff] }
  0x69   : > { %603 = vrot.lane.b32.xlu2 %v312_v35, %s1263_s19 }
  0x6b   : > { %v542_v39 = vpop.permute.xlu2 %541 }
  0x6c   : > { %v922_v40 = vsel %vm917_vm0, %v153_v36, %v542_v39  ;;  %v333_v39 = vld [vmem:[%s1303_s18 + $0x1c0] sm:$0xff] }
  0x6d   : > { %1051 = vst.msk [vmem:[%s1390_s27 + $0x20] sm:$0xff] %vm1046_vm1, %v922_v40 }
  0x70   : > { %607 = vrot.lane.b32.xlu1 %v314_v37, %s1263_s19  ;;  %605 = vrot.lane.b32.xlu0 %v313_v38, %s1263_s19  ;;  %v162_v37 = vld [vmem:[%s1379_s24 + $0x68] sm:$0xff]  ;;  %v161_v38 = vld [vmem:[%s1379_s24 + $0x60] sm:$0xff] }
  0x71   : > { %609 = vrot.lane.b32.xlu2 %v315_v41, %s1263_s19 }
  0x73   : > { %v544_v45 = vpop.permute.xlu2 %543 }
  0x74   : > { %v923_v46 = vsel %vm917_vm0, %v154_v42, %v544_v45  ;;  %v335_v45 = vld [vmem:[%s1303_s18 + $0x1d0] sm:$0xff] }
  0x75   : > { %1052 = vst.msk [vmem:[%s1390_s27 + $0x28] sm:$0xff] %vm1046_vm1, %v923_v46  ;;  %v334_v46 = vld [vmem:[%s1303_s18 + $0x1c8] sm:$0xff] }
  0x78   : > { %613 = vrot.lane.b32.xlu1 %v317_v43, %s1263_s19  ;;  %611 = vrot.lane.b32.xlu0 %v316_v44, %s1263_s19  ;;  %v172_v44 = vld [vmem:[%s1379_s24 + $0xb8] sm:$0xff] }
  0x79   : > { %615 = vrot.lane.b32.xlu2 %v318_v47, %s1263_s19 }
  0x7b   : > { %v550_v51 = vpop.permute.xlu2 %549 }
  0x7c   : > { %v926_v52 = vsel %vm917_vm0, %v157_v48, %v550_v51  ;;  %v336_v51 = vld [vmem:[%s1303_s18 + $0x1d8] sm:$0xff] }
  0x7d   : > { %1055 = vst.msk [vmem:[%s1390_s27 + $0x40] sm:$0xff] %vm1046_vm1, %v926_v52 }
  0x80   : > { %619 = vrot.lane.b32.xlu1 %v320_v49, %s1263_s19  ;;  %617 = vrot.lane.b32.xlu0 %v319_v50, %s1263_s19  ;;  %v165_v49 = vld [vmem:[%s1379_s24 + $0x80] sm:$0xff]  ;;  %v164_v50 = vld [vmem:[%s1379_s24 + $0x78] sm:$0xff] }
  0x81   : > { %621 = vrot.lane.b32.xlu2 %v321_v55, %s1263_s19 }
  0x82   : > { %v538_v56 = vpop.permute.xlu1 %537  ;;  %v534_v57 = vpop.permute.xlu0 %533 }
  0x83   : > { %v920_v58 = vsel %vm917_vm0, %v151_v53, %v538_v56  ;;  %v918_v59 = vsel %vm917_vm0, %v149_v54, %v534_v57  ;;  %v556_v63 = vpop.permute.xlu2 %555  ;;  %v175_v56 = vld [vmem:[%s1379_s24 + $0xd0] sm:$0xff]  ;;  %v338_v57 = vld [vmem:[%s1303_s18 + $0x1e8] sm:$0xff] }
  0x84   : > { %1049 = vst.msk [vmem:[%s1390_s27 + $0x10] sm:$0xff] %vm1046_vm1, %v920_v58  ;;  %v929_v0 = vsel %vm917_vm0, %v160_v60, %v556_v63  ;;  %v337_v58 = vld [vmem:[%s1303_s18 + $0x1e0] sm:$0xff]  ;;  %v339_v63 = vld [vmem:[%s1303_s18 + $0x1f0] sm:$0xff] }
  0x85   : > { %1047 = vst.msk [vmem:[%s1390_s27] sm:$0xff] %vm1046_vm1, %v918_v59 }
  0x86   : > { %1058 = vst.msk [vmem:[%s1390_s27 + $0x58] sm:$0xff] %vm1046_vm1, %v929_v0 }
  0x88   : > { %625 = vrot.lane.b32.xlu1 %v323_v61, %s1263_s19  ;;  %623 = vrot.lane.b32.xlu0 %v322_v62, %s1263_s19  ;;  %v168_v61 = vld [vmem:[%s1379_s24 + $0x98] sm:$0xff]  ;;  %v167_v62 = vld [vmem:[%s1379_s24 + $0x90] sm:$0xff] }
  0x89   : > { %627 = vrot.lane.b32.xlu2 %v324_v3, %s1263_s19 }
  0x8a   : > { %v540_v4 = vpop.permute.xlu1 %539  ;;  %v536_v5 = vpop.permute.xlu0 %535 }
  0x8b   : > { %v921_v6 = vsel %vm917_vm0, %v152_v1, %v540_v4  ;;  %v919_v7 = vsel %vm917_vm0, %v150_v2, %v536_v5  ;;  %v562_v11 = vpop.permute.xlu2 %561  ;;  %v178_v4 = vld [vmem:[%s1379_s24 + $0xe8] sm:$0xff]  ;;  %v341_v5 = vld [vmem:[%s1303_s18 + $0x200] sm:$0xff] }
  0x8c   : > { %1050 = vst.msk [vmem:[%s1390_s27 + $0x18] sm:$0xff] %vm1046_vm1, %v921_v6  ;;  %v932_v12 = vsel %vm917_vm0, %v163_v8, %v562_v11  ;;  %v340_v6 = vld [vmem:[%s1303_s18 + $0x1f8] sm:$0xff]  ;;  %v342_v11 = vld [vmem:[%s1303_s18 + $0x208] sm:$0xff] }
  0x8d   : > { %1048 = vst.msk [vmem:[%s1390_s27 + $0x8] sm:$0xff] %vm1046_vm1, %v919_v7 }
  0x8e   : > { %1061 = vst.msk [vmem:[%s1390_s27 + $0x70] sm:$0xff] %vm1046_vm1, %v932_v12 }
  0x90   : > { %631 = vrot.lane.b32.xlu1 %v326_v9, %s1263_s19  ;;  %629 = vrot.lane.b32.xlu0 %v325_v10, %s1263_s19  ;;  %v171_v9 = vld [vmem:[%s1379_s24 + $0xb0] sm:$0xff]  ;;  %v170_v10 = vld [vmem:[%s1379_s24 + $0xa8] sm:$0xff] }
  0x91   : > { %633 = vrot.lane.b32.xlu2 %v327_v15, %s1263_s19 }
  0x92   : > { %v548_v16 = vpop.permute.xlu1 %547  ;;  %v546_v17 = vpop.permute.xlu0 %545 }
  0x93   : > { %v925_v18 = vsel %vm917_vm0, %v156_v13, %v548_v16  ;;  %v924_v19 = vsel %vm917_vm0, %v155_v14, %v546_v17  ;;  %v568_v23 = vpop.permute.xlu2 %567  ;;  %v181_v16 = vld [vmem:[%s1379_s24 + $0x100] sm:$0xff]  ;;  %v344_v17 = vld [vmem:[%s1303_s18 + $0x218] sm:$0xff] }
  0x94   : > { %1054 = vst.msk [vmem:[%s1390_s27 + $0x38] sm:$0xff] %vm1046_vm1, %v925_v18  ;;  %v935_v24 = vsel %vm917_vm0, %v166_v20, %v568_v23  ;;  %v343_v18 = vld [vmem:[%s1303_s18 + $0x210] sm:$0xff]  ;;  %v345_v23 = vld [vmem:[%s1303_s18 + $0x220] sm:$0xff] }
  0x95   : > { %1053 = vst.msk [vmem:[%s1390_s27 + $0x30] sm:$0xff] %vm1046_vm1, %v924_v19 }
  0x96   : > { %1064 = vst.msk [vmem:[%s1390_s27 + $0x88] sm:$0xff] %vm1046_vm1, %v935_v24 }
  0x98   : > { %637 = vrot.lane.b32.xlu1 %v329_v21, %s1263_s19  ;;  %635 = vrot.lane.b32.xlu0 %v328_v22, %s1263_s19  ;;  %v174_v21 = vld [vmem:[%s1379_s24 + $0xc8] sm:$0xff]  ;;  %v173_v22 = vld [vmem:[%s1379_s24 + $0xc0] sm:$0xff] }
  0x99   : > { %639 = vrot.lane.b32.xlu2 %v330_v27, %s1263_s19 }
  0x9a   : > { %v554_v28 = vpop.permute.xlu1 %553  ;;  %v552_v29 = vpop.permute.xlu0 %551 }
  0x9b   : > { %v928_v30 = vsel %vm917_vm0, %v159_v25, %v554_v28  ;;  %v927_v31 = vsel %vm917_vm0, %v158_v26, %v552_v29  ;;  %v574_v35 = vpop.permute.xlu2 %573  ;;  %v184_v28 = vld [vmem:[%s1379_s24 + $0x118] sm:$0xff]  ;;  %v347_v29 = vld [vmem:[%s1303_s18 + $0x230] sm:$0xff] }
  0x9c   : > { %1057 = vst.msk [vmem:[%s1390_s27 + $0x50] sm:$0xff] %vm1046_vm1, %v928_v30  ;;  %v938_v36 = vsel %vm917_vm0, %v169_v32, %v574_v35  ;;  %v346_v30 = vld [vmem:[%s1303_s18 + $0x228] sm:$0xff]  ;;  %v348_v35 = vld [vmem:[%s1303_s18 + $0x238] sm:$0xff] }
  0x9d   : > { %1056 = vst.msk [vmem:[%s1390_s27 + $0x48] sm:$0xff] %vm1046_vm1, %v927_v31 }
  0x9e   : > { %1067 = vst.msk [vmem:[%s1390_s27 + $0xa0] sm:$0xff] %vm1046_vm1, %v938_v36 }
  0xa0   : > { %643 = vrot.lane.b32.xlu1 %v332_v33, %s1263_s19  ;;  %641 = vrot.lane.b32.xlu0 %v331_v34, %s1263_s19  ;;  %v177_v33 = vld [vmem:[%s1379_s24 + $0xe0] sm:$0xff]  ;;  %v176_v34 = vld [vmem:[%s1379_s24 + $0xd8] sm:$0xff] }
  0xa1   : > { %645 = vrot.lane.b32.xlu2 %v333_v39, %s1263_s19 }
  0xa2   : > { %v560_v40 = vpop.permute.xlu1 %559  ;;  %v558_v41 = vpop.permute.xlu0 %557 }
  0xa3   : > { %v931_v42 = vsel %vm917_vm0, %v162_v37, %v560_v40  ;;  %v930_v43 = vsel %vm917_vm0, %v161_v38, %v558_v41  ;;  %v580_v47 = vpop.permute.xlu2 %579  ;;  %v187_v40 = vld [vmem:[%s1379_s24 + $0x130] sm:$0xff]  ;;  %v350_v41 = vld [vmem:[%s1303_s18 + $0x248] sm:$0xff] }
  0xa4   : > { %1060 = vst.msk [vmem:[%s1390_s27 + $0x68] sm:$0xff] %vm1046_vm1, %v931_v42  ;;  %v941_v48 = vsel %vm917_vm0, %v172_v44, %v580_v47  ;;  %v349_v42 = vld [vmem:[%s1303_s18 + $0x240] sm:$0xff]  ;;  %v351_v47 = vld [vmem:[%s1303_s18 + $0x250] sm:$0xff] }
  0xa5   : > { %1059 = vst.msk [vmem:[%s1390_s27 + $0x60] sm:$0xff] %vm1046_vm1, %v930_v43 }
  0xa6   : > { %1070 = vst.msk [vmem:[%s1390_s27 + $0xb8] sm:$0xff] %vm1046_vm1, %v941_v48 }
  0xa8   : > { %649 = vrot.lane.b32.xlu1 %v335_v45, %s1263_s19  ;;  %647 = vrot.lane.b32.xlu0 %v334_v46, %s1263_s19  ;;  %v180_v45 = vld [vmem:[%s1379_s24 + $0xf8] sm:$0xff]  ;;  %v179_v46 = vld [vmem:[%s1379_s24 + $0xf0] sm:$0xff] }
  0xa9   : > { %651 = vrot.lane.b32.xlu2 %v336_v51, %s1263_s19 }
  0xaa   : > { %v566_v52 = vpop.permute.xlu1 %565  ;;  %v564_v53 = vpop.permute.xlu0 %563 }
  0xab   : > { %v934_v54 = vsel %vm917_vm0, %v165_v49, %v566_v52  ;;  %v933_v55 = vsel %vm917_vm0, %v164_v50, %v564_v53  ;;  %v586_v59 = vpop.permute.xlu2 %585  ;;  %v190_v52 = vld [vmem:[%s1379_s24 + $0x148] sm:$0xff]  ;;  %v353_v53 = vld [vmem:[%s1303_s18 + $0x260] sm:$0xff] }
  0xac   : > { %1063 = vst.msk [vmem:[%s1390_s27 + $0x80] sm:$0xff] %vm1046_vm1, %v934_v54  ;;  %v944_v60 = vsel %vm917_vm0, %v175_v56, %v586_v59  ;;  %v352_v54 = vld [vmem:[%s1303_s18 + $0x258] sm:$0xff]  ;;  %v354_v59 = vld [vmem:[%s1303_s18 + $0x268] sm:$0xff] }
  0xad   : > { %1062 = vst.msk [vmem:[%s1390_s27 + $0x78] sm:$0xff] %vm1046_vm1, %v933_v55 }
  0xae   : > { %1073 = vst.msk [vmem:[%s1390_s27 + $0xd0] sm:$0xff] %vm1046_vm1, %v944_v60 }
  0xb0   : > { %655 = vrot.lane.b32.xlu1 %v338_v57, %s1263_s19  ;;  %653 = vrot.lane.b32.xlu0 %v337_v58, %s1263_s19  ;;  %v183_v57 = vld [vmem:[%s1379_s24 + $0x110] sm:$0xff]  ;;  %v182_v58 = vld [vmem:[%s1379_s24 + $0x108] sm:$0xff] }
  0xb1   : > { %657 = vrot.lane.b32.xlu2 %v339_v63, %s1263_s19 }
  0xb2   : > { %v572_v0 = vpop.permute.xlu1 %571  ;;  %v570_v1 = vpop.permute.xlu0 %569 }
  0xb3   : > { %v937_v2 = vsel %vm917_vm0, %v168_v61, %v572_v0  ;;  %v936_v3 = vsel %vm917_vm0, %v167_v62, %v570_v1  ;;  %v592_v7 = vpop.permute.xlu2 %591  ;;  %v193_v0 = vld [vmem:[%s1379_s24 + $0x160] sm:$0xff]  ;;  %v356_v1 = vld [vmem:[%s1303_s18 + $0x278] sm:$0xff] }
  0xb4   : > { %1066 = vst.msk [vmem:[%s1390_s27 + $0x98] sm:$0xff] %vm1046_vm1, %v937_v2  ;;  %v947_v8 = vsel %vm917_vm0, %v178_v4, %v592_v7  ;;  %v355_v2 = vld [vmem:[%s1303_s18 + $0x270] sm:$0xff]  ;;  %v357_v7 = vld [vmem:[%s1303_s18 + $0x280] sm:$0xff] }
  0xb5   : > { %1065 = vst.msk [vmem:[%s1390_s27 + $0x90] sm:$0xff] %vm1046_vm1, %v936_v3 }
  0xb6   : > { %1076 = vst.msk [vmem:[%s1390_s27 + $0xe8] sm:$0xff] %vm1046_vm1, %v947_v8 }
  0xb8   : > { %661 = vrot.lane.b32.xlu1 %v341_v5, %s1263_s19  ;;  %659 = vrot.lane.b32.xlu0 %v340_v6, %s1263_s19  ;;  %v186_v5 = vld [vmem:[%s1379_s24 + $0x128] sm:$0xff]  ;;  %v185_v6 = vld [vmem:[%s1379_s24 + $0x120] sm:$0xff] }
  0xb9   : > { %663 = vrot.lane.b32.xlu2 %v342_v11, %s1263_s19 }
  0xba   : > { %v578_v12 = vpop.permute.xlu1 %577  ;;  %v576_v13 = vpop.permute.xlu0 %575 }
  0xbb   : > { %v940_v14 = vsel %vm917_vm0, %v171_v9, %v578_v12  ;;  %v939_v15 = vsel %vm917_vm0, %v170_v10, %v576_v13  ;;  %v598_v19 = vpop.permute.xlu2 %597  ;;  %v196_v12 = vld [vmem:[%s1379_s24 + $0x178] sm:$0xff]  ;;  %v359_v13 = vld [vmem:[%s1303_s18 + $0x290] sm:$0xff] }
  0xbc   : > { %1069 = vst.msk [vmem:[%s1390_s27 + $0xb0] sm:$0xff] %vm1046_vm1, %v940_v14  ;;  %v950_v20 = vsel %vm917_vm0, %v181_v16, %v598_v19  ;;  %v358_v14 = vld [vmem:[%s1303_s18 + $0x288] sm:$0xff]  ;;  %v360_v19 = vld [vmem:[%s1303_s18 + $0x298] sm:$0xff] }
  0xbd   : > { %1068 = vst.msk [vmem:[%s1390_s27 + $0xa8] sm:$0xff] %vm1046_vm1, %v939_v15 }
  0xbe   : > { %1079 = vst.msk [vmem:[%s1390_s27 + $0x100] sm:$0xff] %vm1046_vm1, %v950_v20 }
  0xc0   : > { %667 = vrot.lane.b32.xlu1 %v344_v17, %s1263_s19  ;;  %665 = vrot.lane.b32.xlu0 %v343_v18, %s1263_s19  ;;  %v189_v17 = vld [vmem:[%s1379_s24 + $0x140] sm:$0xff]  ;;  %v188_v18 = vld [vmem:[%s1379_s24 + $0x138] sm:$0xff] }
  0xc1   : > { %669 = vrot.lane.b32.xlu2 %v345_v23, %s1263_s19 }
  0xc2   : > { %v584_v24 = vpop.permute.xlu1 %583  ;;  %v582_v25 = vpop.permute.xlu0 %581 }
  0xc3   : > { %v943_v26 = vsel %vm917_vm0, %v174_v21, %v584_v24  ;;  %v942_v27 = vsel %vm917_vm0, %v173_v22, %v582_v25  ;;  %v604_v31 = vpop.permute.xlu2 %603  ;;  %v199_v24 = vld [vmem:[%s1379_s24 + $0x190] sm:$0xff]  ;;  %v362_v25 = vld [vmem:[%s1303_s18 + $0x2a8] sm:$0xff] }
  0xc4   : > { %1072 = vst.msk [vmem:[%s1390_s27 + $0xc8] sm:$0xff] %vm1046_vm1, %v943_v26  ;;  %v953_v32 = vsel %vm917_vm0, %v184_v28, %v604_v31  ;;  %v361_v26 = vld [vmem:[%s1303_s18 + $0x2a0] sm:$0xff]  ;;  %v363_v31 = vld [vmem:[%s1303_s18 + $0x2b0] sm:$0xff] }
  0xc5   : > { %1071 = vst.msk [vmem:[%s1390_s27 + $0xc0] sm:$0xff] %vm1046_vm1, %v942_v27 }
  0xc6   : > { %1082 = vst.msk [vmem:[%s1390_s27 + $0x118] sm:$0xff] %vm1046_vm1, %v953_v32 }
  0xc8   : > { %673 = vrot.lane.b32.xlu1 %v347_v29, %s1263_s19  ;;  %671 = vrot.lane.b32.xlu0 %v346_v30, %s1263_s19  ;;  %v192_v29 = vld [vmem:[%s1379_s24 + $0x158] sm:$0xff]  ;;  %v191_v30 = vld [vmem:[%s1379_s24 + $0x150] sm:$0xff] }
  0xc9   : > { %675 = vrot.lane.b32.xlu2 %v348_v35, %s1263_s19 }
  0xca   : > { %v590_v36 = vpop.permute.xlu1 %589  ;;  %v588_v37 = vpop.permute.xlu0 %587 }
  0xcb   : > { %v946_v38 = vsel %vm917_vm0, %v177_v33, %v590_v36  ;;  %v945_v39 = vsel %vm917_vm0, %v176_v34, %v588_v37  ;;  %v610_v43 = vpop.permute.xlu2 %609  ;;  %v202_v36 = vld [vmem:[%s1379_s24 + $0x1a8] sm:$0xff]  ;;  %v365_v37 = vld [vmem:[%s1303_s18 + $0x2c0] sm:$0xff] }
  0xcc   : > { %1075 = vst.msk [vmem:[%s1390_s27 + $0xe0] sm:$0xff] %vm1046_vm1, %v946_v38  ;;  %v956_v44 = vsel %vm917_vm0, %v187_v40, %v610_v43  ;;  %v364_v38 = vld [vmem:[%s1303_s18 + $0x2b8] sm:$0xff]  ;;  %v366_v43 = vld [vmem:[%s1303_s18 + $0x2c8] sm:$0xff] }
  0xcd   : > { %1074 = vst.msk [vmem:[%s1390_s27 + $0xd8] sm:$0xff] %vm1046_vm1, %v945_v39 }
  0xce   : > { %1085 = vst.msk [vmem:[%s1390_s27 + $0x130] sm:$0xff] %vm1046_vm1, %v956_v44 }
  0xd0   : > { %679 = vrot.lane.b32.xlu1 %v350_v41, %s1263_s19  ;;  %677 = vrot.lane.b32.xlu0 %v349_v42, %s1263_s19  ;;  %v195_v41 = vld [vmem:[%s1379_s24 + $0x170] sm:$0xff]  ;;  %v194_v42 = vld [vmem:[%s1379_s24 + $0x168] sm:$0xff] }
  0xd1   : > { %681 = vrot.lane.b32.xlu2 %v351_v47, %s1263_s19 }
  0xd2   : > { %v596_v48 = vpop.permute.xlu1 %595  ;;  %v594_v49 = vpop.permute.xlu0 %593 }
  0xd3   : > { %v949_v50 = vsel %vm917_vm0, %v180_v45, %v596_v48  ;;  %v948_v51 = vsel %vm917_vm0, %v179_v46, %v594_v49  ;;  %v616_v55 = vpop.permute.xlu2 %615  ;;  %v205_v48 = vld [vmem:[%s1379_s24 + $0x1c0] sm:$0xff]  ;;  %v368_v49 = vld [vmem:[%s1303_s18 + $0x2d8] sm:$0xff] }
  0xd4   : > { %1078 = vst.msk [vmem:[%s1390_s27 + $0xf8] sm:$0xff] %vm1046_vm1, %v949_v50  ;;  %v959_v56 = vsel %vm917_vm0, %v190_v52, %v616_v55  ;;  %v367_v50 = vld [vmem:[%s1303_s18 + $0x2d0] sm:$0xff]  ;;  %v369_v55 = vld [vmem:[%s1303_s18 + $0x2e0] sm:$0xff] }
  0xd5   : > { %1077 = vst.msk [vmem:[%s1390_s27 + $0xf0] sm:$0xff] %vm1046_vm1, %v948_v51 }
  0xd6   : > { %1088 = vst.msk [vmem:[%s1390_s27 + $0x148] sm:$0xff] %vm1046_vm1, %v959_v56 }
  0xd8   : > { %685 = vrot.lane.b32.xlu1 %v353_v53, %s1263_s19  ;;  %683 = vrot.lane.b32.xlu0 %v352_v54, %s1263_s19  ;;  %v198_v53 = vld [vmem:[%s1379_s24 + $0x188] sm:$0xff]  ;;  %v197_v54 = vld [vmem:[%s1379_s24 + $0x180] sm:$0xff] }
  0xd9   : > { %687 = vrot.lane.b32.xlu2 %v354_v59, %s1263_s19 }
  0xda   : > { %v602_v60 = vpop.permute.xlu1 %601  ;;  %v600_v61 = vpop.permute.xlu0 %599 }
  0xdb   : > { %v952_v62 = vsel %vm917_vm0, %v183_v57, %v602_v60  ;;  %v951_v63 = vsel %vm917_vm0, %v182_v58, %v600_v61  ;;  %v622_v3 = vpop.permute.xlu2 %621  ;;  %v208_v60 = vld [vmem:[%s1379_s24 + $0x1d8] sm:$0xff]  ;;  %v371_v61 = vld [vmem:[%s1303_s18 + $0x2f0] sm:$0xff] }
  0xdc   : > { %1081 = vst.msk [vmem:[%s1390_s27 + $0x110] sm:$0xff] %vm1046_vm1, %v952_v62  ;;  %v962_v4 = vsel %vm917_vm0, %v193_v0, %v622_v3  ;;  %v370_v62 = vld [vmem:[%s1303_s18 + $0x2e8] sm:$0xff]  ;;  %v372_v3 = vld [vmem:[%s1303_s18 + $0x2f8] sm:$0xff] }
  0xdd   : > { %1080 = vst.msk [vmem:[%s1390_s27 + $0x108] sm:$0xff] %vm1046_vm1, %v951_v63 }
  0xde   : > { %1091 = vst.msk [vmem:[%s1390_s27 + $0x160] sm:$0xff] %vm1046_vm1, %v962_v4 }
  0xe0   : > { %691 = vrot.lane.b32.xlu1 %v356_v1, %s1263_s19  ;;  %689 = vrot.lane.b32.xlu0 %v355_v2, %s1263_s19  ;;  %v201_v1 = vld [vmem:[%s1379_s24 + $0x1a0] sm:$0xff]  ;;  %v200_v2 = vld [vmem:[%s1379_s24 + $0x198] sm:$0xff] }
  0xe1   : > { %693 = vrot.lane.b32.xlu2 %v357_v7, %s1263_s19 }
  0xe2   : > { %v608_v8 = vpop.permute.xlu1 %607  ;;  %v606_v9 = vpop.permute.xlu0 %605 }
  0xe3   : > { %v955_v10 = vsel %vm917_vm0, %v186_v5, %v608_v8  ;;  %v954_v11 = vsel %vm917_vm0, %v185_v6, %v606_v9  ;;  %v628_v15 = vpop.permute.xlu2 %627  ;;  %v211_v8 = vld [vmem:[%s1379_s24 + $0x1f0] sm:$0xff]  ;;  %v374_v9 = vld [vmem:[%s1303_s18 + $0x308] sm:$0xff] }
  0xe4   : > { %1084 = vst.msk [vmem:[%s1390_s27 + $0x128] sm:$0xff] %vm1046_vm1, %v955_v10  ;;  %v965_v16 = vsel %vm917_vm0, %v196_v12, %v628_v15  ;;  %v373_v10 = vld [vmem:[%s1303_s18 + $0x300] sm:$0xff]  ;;  %v375_v15 = vld [vmem:[%s1303_s18 + $0x310] sm:$0xff] }
  0xe5   : > { %1083 = vst.msk [vmem:[%s1390_s27 + $0x120] sm:$0xff] %vm1046_vm1, %v954_v11 }
  0xe6   : > { %1094 = vst.msk [vmem:[%s1390_s27 + $0x178] sm:$0xff] %vm1046_vm1, %v965_v16 }
  0xe8   : > { %697 = vrot.lane.b32.xlu1 %v359_v13, %s1263_s19  ;;  %695 = vrot.lane.b32.xlu0 %v358_v14, %s1263_s19  ;;  %v204_v13 = vld [vmem:[%s1379_s24 + $0x1b8] sm:$0xff]  ;;  %v203_v14 = vld [vmem:[%s1379_s24 + $0x1b0] sm:$0xff] }
  0xe9   : > { %699 = vrot.lane.b32.xlu2 %v360_v19, %s1263_s19 }
  0xea   : > { %v614_v20 = vpop.permute.xlu1 %613  ;;  %v612_v21 = vpop.permute.xlu0 %611 }
  0xeb   : > { %v958_v22 = vsel %vm917_vm0, %v189_v17, %v614_v20  ;;  %v957_v23 = vsel %vm917_vm0, %v188_v18, %v612_v21  ;;  %v634_v27 = vpop.permute.xlu2 %633  ;;  %v214_v20 = vld [vmem:[%s1379_s24 + $0x208] sm:$0xff]  ;;  %v377_v21 = vld [vmem:[%s1303_s18 + $0x320] sm:$0xff] }
  0xec   : > { %1087 = vst.msk [vmem:[%s1390_s27 + $0x140] sm:$0xff] %vm1046_vm1, %v958_v22  ;;  %v968_v28 = vsel %vm917_vm0, %v199_v24, %v634_v27  ;;  %v376_v22 = vld [vmem:[%s1303_s18 + $0x318] sm:$0xff]  ;;  %v378_v27 = vld [vmem:[%s1303_s18 + $0x328] sm:$0xff] }
  0xed   : > { %1086 = vst.msk [vmem:[%s1390_s27 + $0x138] sm:$0xff] %vm1046_vm1, %v957_v23 }
  0xee   : > { %1097 = vst.msk [vmem:[%s1390_s27 + $0x190] sm:$0xff] %vm1046_vm1, %v968_v28 }
  0xf0   : > { %703 = vrot.lane.b32.xlu1 %v362_v25, %s1263_s19  ;;  %701 = vrot.lane.b32.xlu0 %v361_v26, %s1263_s19  ;;  %v207_v25 = vld [vmem:[%s1379_s24 + $0x1d0] sm:$0xff]  ;;  %v206_v26 = vld [vmem:[%s1379_s24 + $0x1c8] sm:$0xff] }
  0xf1   : > { %705 = vrot.lane.b32.xlu2 %v363_v31, %s1263_s19 }
  0xf2   : > { %v620_v32 = vpop.permute.xlu1 %619  ;;  %v618_v33 = vpop.permute.xlu0 %617 }
  0xf3   : > { %v961_v34 = vsel %vm917_vm0, %v192_v29, %v620_v32  ;;  %v960_v35 = vsel %vm917_vm0, %v191_v30, %v618_v33  ;;  %v640_v39 = vpop.permute.xlu2 %639  ;;  %v217_v32 = vld [vmem:[%s1379_s24 + $0x220] sm:$0xff]  ;;  %v380_v33 = vld [vmem:[%s1303_s18 + $0x338] sm:$0xff] }
  0xf4   : > { %1090 = vst.msk [vmem:[%s1390_s27 + $0x158] sm:$0xff] %vm1046_vm1, %v961_v34  ;;  %v971_v40 = vsel %vm917_vm0, %v202_v36, %v640_v39  ;;  %v379_v34 = vld [vmem:[%s1303_s18 + $0x330] sm:$0xff]  ;;  %v381_v39 = vld [vmem:[%s1303_s18 + $0x340] sm:$0xff] }
  0xf5   : > { %1089 = vst.msk [vmem:[%s1390_s27 + $0x150] sm:$0xff] %vm1046_vm1, %v960_v35 }
  0xf6   : > { %1100 = vst.msk [vmem:[%s1390_s27 + $0x1a8] sm:$0xff] %vm1046_vm1, %v971_v40 }
  0xf8   : > { %709 = vrot.lane.b32.xlu1 %v365_v37, %s1263_s19  ;;  %707 = vrot.lane.b32.xlu0 %v364_v38, %s1263_s19  ;;  %v210_v37 = vld [vmem:[%s1379_s24 + $0x1e8] sm:$0xff]  ;;  %v209_v38 = vld [vmem:[%s1379_s24 + $0x1e0] sm:$0xff] }
  0xf9   : > { %711 = vrot.lane.b32.xlu2 %v366_v43, %s1263_s19 }
  0xfa   : > { %v626_v44 = vpop.permute.xlu1 %625  ;;  %v624_v45 = vpop.permute.xlu0 %623 }
  0xfb   : > { %v964_v46 = vsel %vm917_vm0, %v195_v41, %v626_v44  ;;  %v963_v47 = vsel %vm917_vm0, %v194_v42, %v624_v45  ;;  %v646_v51 = vpop.permute.xlu2 %645  ;;  %v220_v44 = vld [vmem:[%s1379_s24 + $0x238] sm:$0xff]  ;;  %v383_v45 = vld [vmem:[%s1303_s18 + $0x350] sm:$0xff] }
  0xfc   : > { %1093 = vst.msk [vmem:[%s1390_s27 + $0x170] sm:$0xff] %vm1046_vm1, %v964_v46  ;;  %v974_v52 = vsel %vm917_vm0, %v205_v48, %v646_v51  ;;  %v382_v46 = vld [vmem:[%s1303_s18 + $0x348] sm:$0xff]  ;;  %v384_v51 = vld [vmem:[%s1303_s18 + $0x358] sm:$0xff] }
  0xfd   : > { %1092 = vst.msk [vmem:[%s1390_s27 + $0x168] sm:$0xff] %vm1046_vm1, %v963_v47 }
  0xfe   : > { %1103 = vst.msk [vmem:[%s1390_s27 + $0x1c0] sm:$0xff] %vm1046_vm1, %v974_v52 }
 0x100   : > { %715 = vrot.lane.b32.xlu1 %v368_v49, %s1263_s19  ;;  %713 = vrot.lane.b32.xlu0 %v367_v50, %s1263_s19  ;;  %v213_v49 = vld [vmem:[%s1379_s24 + $0x200] sm:$0xff]  ;;  %v212_v50 = vld [vmem:[%s1379_s24 + $0x1f8] sm:$0xff] }
 0x101   : > { %717 = vrot.lane.b32.xlu2 %v369_v55, %s1263_s19 }
 0x102   : > { %v632_v56 = vpop.permute.xlu1 %631  ;;  %v630_v57 = vpop.permute.xlu0 %629 }
 0x103   : > { %v967_v58 = vsel %vm917_vm0, %v198_v53, %v632_v56  ;;  %v966_v59 = vsel %vm917_vm0, %v197_v54, %v630_v57  ;;  %v652_v63 = vpop.permute.xlu2 %651  ;;  %v223_v56 = vld [vmem:[%s1379_s24 + $0x250] sm:$0xff]  ;;  %v386_v57 = vld [vmem:[%s1303_s18 + $0x368] sm:$0xff] }
 0x104   : > { %1096 = vst.msk [vmem:[%s1390_s27 + $0x188] sm:$0xff] %vm1046_vm1, %v967_v58  ;;  %v977_v0 = vsel %vm917_vm0, %v208_v60, %v652_v63  ;;  %v385_v58 = vld [vmem:[%s1303_s18 + $0x360] sm:$0xff]  ;;  %v387_v63 = vld [vmem:[%s1303_s18 + $0x370] sm:$0xff] }
 0x105   : > { %1095 = vst.msk [vmem:[%s1390_s27 + $0x180] sm:$0xff] %vm1046_vm1, %v966_v59 }
 0x106   : > { %1106 = vst.msk [vmem:[%s1390_s27 + $0x1d8] sm:$0xff] %vm1046_vm1, %v977_v0 }
 0x108   : > { %721 = vrot.lane.b32.xlu1 %v371_v61, %s1263_s19  ;;  %719 = vrot.lane.b32.xlu0 %v370_v62, %s1263_s19  ;;  %v216_v61 = vld [vmem:[%s1379_s24 + $0x218] sm:$0xff]  ;;  %v215_v62 = vld [vmem:[%s1379_s24 + $0x210] sm:$0xff] }
 0x109   : > { %723 = vrot.lane.b32.xlu2 %v372_v3, %s1263_s19 }
 0x10a   : > { %v638_v4 = vpop.permute.xlu1 %637  ;;  %v636_v5 = vpop.permute.xlu0 %635 }
 0x10b   : > { %v970_v6 = vsel %vm917_vm0, %v201_v1, %v638_v4  ;;  %v969_v7 = vsel %vm917_vm0, %v200_v2, %v636_v5  ;;  %v658_v11 = vpop.permute.xlu2 %657  ;;  %v226_v4 = vld [vmem:[%s1379_s24 + $0x268] sm:$0xff]  ;;  %v389_v5 = vld [vmem:[%s1303_s18 + $0x380] sm:$0xff] }
 0x10c   : > { %1099 = vst.msk [vmem:[%s1390_s27 + $0x1a0] sm:$0xff] %vm1046_vm1, %v970_v6  ;;  %v980_v12 = vsel %vm917_vm0, %v211_v8, %v658_v11  ;;  %v388_v6 = vld [vmem:[%s1303_s18 + $0x378] sm:$0xff]  ;;  %v390_v11 = vld [vmem:[%s1303_s18 + $0x388] sm:$0xff] }
 0x10d   : > { %1098 = vst.msk [vmem:[%s1390_s27 + $0x198] sm:$0xff] %vm1046_vm1, %v969_v7 }
 0x10e   : > { %1109 = vst.msk [vmem:[%s1390_s27 + $0x1f0] sm:$0xff] %vm1046_vm1, %v980_v12 }
 0x110   : > { %727 = vrot.lane.b32.xlu1 %v374_v9, %s1263_s19  ;;  %725 = vrot.lane.b32.xlu0 %v373_v10, %s1263_s19  ;;  %v219_v9 = vld [vmem:[%s1379_s24 + $0x230] sm:$0xff]  ;;  %v218_v10 = vld [vmem:[%s1379_s24 + $0x228] sm:$0xff] }
 0x111   : > { %729 = vrot.lane.b32.xlu2 %v375_v15, %s1263_s19 }
 0x112   : > { %v644_v16 = vpop.permute.xlu1 %643  ;;  %v642_v17 = vpop.permute.xlu0 %641 }
 0x113   : > { %v973_v18 = vsel %vm917_vm0, %v204_v13, %v644_v16  ;;  %v972_v19 = vsel %vm917_vm0, %v203_v14, %v642_v17  ;;  %v664_v23 = vpop.permute.xlu2 %663  ;;  %v229_v16 = vld [vmem:[%s1379_s24 + $0x280] sm:$0xff]  ;;  %v392_v17 = vld [vmem:[%s1303_s18 + $0x398] sm:$0xff] }
 0x114   : > { %1102 = vst.msk [vmem:[%s1390_s27 + $0x1b8] sm:$0xff] %vm1046_vm1, %v973_v18  ;;  %v983_v24 = vsel %vm917_vm0, %v214_v20, %v664_v23  ;;  %v391_v18 = vld [vmem:[%s1303_s18 + $0x390] sm:$0xff]  ;;  %v393_v23 = vld [vmem:[%s1303_s18 + $0x3a0] sm:$0xff] }
 0x115   : > { %1101 = vst.msk [vmem:[%s1390_s27 + $0x1b0] sm:$0xff] %vm1046_vm1, %v972_v19 }
 0x116   : > { %1112 = vst.msk [vmem:[%s1390_s27 + $0x208] sm:$0xff] %vm1046_vm1, %v983_v24 }
 0x118   : > { %733 = vrot.lane.b32.xlu1 %v377_v21, %s1263_s19  ;;  %731 = vrot.lane.b32.xlu0 %v376_v22, %s1263_s19  ;;  %v222_v21 = vld [vmem:[%s1379_s24 + $0x248] sm:$0xff]  ;;  %v221_v22 = vld [vmem:[%s1379_s24 + $0x240] sm:$0xff] }
 0x119   : > { %735 = vrot.lane.b32.xlu2 %v378_v27, %s1263_s19 }
 0x11a   : > { %v650_v28 = vpop.permute.xlu1 %649  ;;  %v648_v29 = vpop.permute.xlu0 %647 }
 0x11b   : > { %v976_v30 = vsel %vm917_vm0, %v207_v25, %v650_v28  ;;  %v975_v31 = vsel %vm917_vm0, %v206_v26, %v648_v29  ;;  %v670_v35 = vpop.permute.xlu2 %669  ;;  %v232_v28 = vld [vmem:[%s1379_s24 + $0x298] sm:$0xff]  ;;  %v395_v29 = vld [vmem:[%s1303_s18 + $0x3b0] sm:$0xff] }
 0x11c   : > { %1105 = vst.msk [vmem:[%s1390_s27 + $0x1d0] sm:$0xff] %vm1046_vm1, %v976_v30  ;;  %v986_v36 = vsel %vm917_vm0, %v217_v32, %v670_v35  ;;  %v394_v30 = vld [vmem:[%s1303_s18 + $0x3a8] sm:$0xff]  ;;  %v396_v35 = vld [vmem:[%s1303_s18 + $0x3b8] sm:$0xff] }
 0x11d   : > { %1104 = vst.msk [vmem:[%s1390_s27 + $0x1c8] sm:$0xff] %vm1046_vm1, %v975_v31 }
 0x11e   : > { %1115 = vst.msk [vmem:[%s1390_s27 + $0x220] sm:$0xff] %vm1046_vm1, %v986_v36 }
 0x120   : > { %739 = vrot.lane.b32.xlu1 %v380_v33, %s1263_s19  ;;  %737 = vrot.lane.b32.xlu0 %v379_v34, %s1263_s19  ;;  %v225_v33 = vld [vmem:[%s1379_s24 + $0x260] sm:$0xff]  ;;  %v224_v34 = vld [vmem:[%s1379_s24 + $0x258] sm:$0xff] }
 0x121   : > { %741 = vrot.lane.b32.xlu2 %v381_v39, %s1263_s19 }
 0x122   : > { %v656_v40 = vpop.permute.xlu1 %655  ;;  %v654_v41 = vpop.permute.xlu0 %653 }
 0x123   : > { %v979_v42 = vsel %vm917_vm0, %v210_v37, %v656_v40  ;;  %v978_v43 = vsel %vm917_vm0, %v209_v38, %v654_v41  ;;  %v676_v47 = vpop.permute.xlu2 %675  ;;  %v235_v40 = vld [vmem:[%s1379_s24 + $0x2b0] sm:$0xff]  ;;  %v398_v41 = vld [vmem:[%s1303_s18 + $0x3c8] sm:$0xff] }
 0x124   : > { %1108 = vst.msk [vmem:[%s1390_s27 + $0x1e8] sm:$0xff] %vm1046_vm1, %v979_v42  ;;  %v989_v48 = vsel %vm917_vm0, %v220_v44, %v676_v47  ;;  %v397_v42 = vld [vmem:[%s1303_s18 + $0x3c0] sm:$0xff]  ;;  %v399_v47 = vld [vmem:[%s1303_s18 + $0x3d0] sm:$0xff] }
 0x125   : > { %1107 = vst.msk [vmem:[%s1390_s27 + $0x1e0] sm:$0xff] %vm1046_vm1, %v978_v43 }
 0x126   : > { %1118 = vst.msk [vmem:[%s1390_s27 + $0x238] sm:$0xff] %vm1046_vm1, %v989_v48 }
 0x128   : > { %745 = vrot.lane.b32.xlu1 %v383_v45, %s1263_s19  ;;  %743 = vrot.lane.b32.xlu0 %v382_v46, %s1263_s19  ;;  %v228_v45 = vld [vmem:[%s1379_s24 + $0x278] sm:$0xff]  ;;  %v227_v46 = vld [vmem:[%s1379_s24 + $0x270] sm:$0xff] }
 0x129   : > { %747 = vrot.lane.b32.xlu2 %v384_v51, %s1263_s19 }
 0x12a   : > { %v662_v52 = vpop.permute.xlu1 %661  ;;  %v660_v53 = vpop.permute.xlu0 %659 }
 0x12b   : > { %v982_v54 = vsel %vm917_vm0, %v213_v49, %v662_v52  ;;  %v981_v55 = vsel %vm917_vm0, %v212_v50, %v660_v53  ;;  %v682_v59 = vpop.permute.xlu2 %681  ;;  %v238_v52 = vld [vmem:[%s1379_s24 + $0x2c8] sm:$0xff]  ;;  %v401_v53 = vld [vmem:[%s1303_s18 + $0x3e0] sm:$0xff] }
 0x12c   : > { %1111 = vst.msk [vmem:[%s1390_s27 + $0x200] sm:$0xff] %vm1046_vm1, %v982_v54  ;;  %v992_v60 = vsel %vm917_vm0, %v223_v56, %v682_v59  ;;  %v400_v54 = vld [vmem:[%s1303_s18 + $0x3d8] sm:$0xff]  ;;  %v402_v59 = vld [vmem:[%s1303_s18 + $0x3e8] sm:$0xff] }
 0x12d   : > { %1110 = vst.msk [vmem:[%s1390_s27 + $0x1f8] sm:$0xff] %vm1046_vm1, %v981_v55 }
 0x12e   : > { %1121 = vst.msk [vmem:[%s1390_s27 + $0x250] sm:$0xff] %vm1046_vm1, %v992_v60 }
 0x130   : > { %751 = vrot.lane.b32.xlu1 %v386_v57, %s1263_s19  ;;  %749 = vrot.lane.b32.xlu0 %v385_v58, %s1263_s19  ;;  %v231_v57 = vld [vmem:[%s1379_s24 + $0x290] sm:$0xff]  ;;  %v230_v58 = vld [vmem:[%s1379_s24 + $0x288] sm:$0xff] }
 0x131   : > { %753 = vrot.lane.b32.xlu2 %v387_v63, %s1263_s19 }
 0x132   : > { %v668_v0 = vpop.permute.xlu1 %667  ;;  %v666_v1 = vpop.permute.xlu0 %665 }
 0x133   : > { %v985_v2 = vsel %vm917_vm0, %v216_v61, %v668_v0  ;;  %v984_v3 = vsel %vm917_vm0, %v215_v62, %v666_v1  ;;  %v688_v7 = vpop.permute.xlu2 %687  ;;  %v241_v0 = vld [vmem:[%s1379_s24 + $0x2e0] sm:$0xff]  ;;  %v404_v1 = vld [vmem:[%s1303_s18 + $0x3f8] sm:$0xff] }
 0x134   : > { %1114 = vst.msk [vmem:[%s1390_s27 + $0x218] sm:$0xff] %vm1046_vm1, %v985_v2  ;;  %v995_v8 = vsel %vm917_vm0, %v226_v4, %v688_v7  ;;  %v403_v2 = vld [vmem:[%s1303_s18 + $0x3f0] sm:$0xff] }
 0x135   : > { %1113 = vst.msk [vmem:[%s1390_s27 + $0x210] sm:$0xff] %vm1046_vm1, %v984_v3 }
 0x136   : > { %1124 = vst.msk [vmem:[%s1390_s27 + $0x268] sm:$0xff] %vm1046_vm1, %v995_v8 }
 0x138   : > { %757 = vrot.lane.b32.xlu1 %v389_v5, %s1263_s19  ;;  %755 = vrot.lane.b32.xlu0 %v388_v6, %s1263_s19  ;;  %v234_v5 = vld [vmem:[%s1379_s24 + $0x2a8] sm:$0xff]  ;;  %v233_v6 = vld [vmem:[%s1379_s24 + $0x2a0] sm:$0xff] }
 0x139   : > { %759 = vrot.lane.b32.xlu2 %v390_v11, %s1263_s19  ;;  %v244_v11 = vld [vmem:[%s1379_s24 + $0x2f8] sm:$0xff] }
 0x13a   : > { %v674_v12 = vpop.permute.xlu1 %673  ;;  %v672_v13 = vpop.permute.xlu0 %671 }
 0x13b   : > { %v988_v14 = vsel %vm917_vm0, %v219_v9, %v674_v12  ;;  %v987_v15 = vsel %vm917_vm0, %v218_v10, %v672_v13  ;;  %v694_v19 = vpop.permute.xlu2 %693 }
 0x13c   : > { %1117 = vst.msk [vmem:[%s1390_s27 + $0x230] sm:$0xff] %vm1046_vm1, %v988_v14  ;;  %v998_v20 = vsel %vm917_vm0, %v229_v16, %v694_v19  ;;  %v237_v14 = vld [vmem:[%s1379_s24 + $0x2c0] sm:$0xff] }
 0x13d   : > { %1116 = vst.msk [vmem:[%s1390_s27 + $0x228] sm:$0xff] %vm1046_vm1, %v987_v15  ;;  %v236_v15 = vld [vmem:[%s1379_s24 + $0x2b8] sm:$0xff] }
 0x13e   : > { %1127 = vst.msk [vmem:[%s1390_s27 + $0x280] sm:$0xff] %vm1046_vm1, %v998_v20  ;;  %v247_v20 = vld [vmem:[%s1379_s24 + $0x310] sm:$0xff] }
 0x140   : > { %763 = vrot.lane.b32.xlu1 %v392_v17, %s1263_s19  ;;  %761 = vrot.lane.b32.xlu0 %v391_v18, %s1263_s19 }
 0x141   : > { %765 = vrot.lane.b32.xlu2 %v393_v23, %s1263_s19  ;;  %v240_v23 = vld [vmem:[%s1379_s24 + $0x2d8] sm:$0xff] }
 0x142   : > { %v680_v24 = vpop.permute.xlu1 %679  ;;  %v678_v25 = vpop.permute.xlu0 %677 }
 0x143   : > { %v991_v26 = vsel %vm917_vm0, %v222_v21, %v680_v24  ;;  %v990_v27 = vsel %vm917_vm0, %v221_v22, %v678_v25  ;;  %v700_v31 = vpop.permute.xlu2 %699  ;;  %v239_v24 = vld [vmem:[%s1379_s24 + $0x2d0] sm:$0xff] }
 0x144   : > { %1120 = vst.msk [vmem:[%s1390_s27 + $0x248] sm:$0xff] %vm1046_vm1, %v991_v26  ;;  %v1001_v32 = vsel %vm917_vm0, %v232_v28, %v700_v31 }
 0x145   : > { %1119 = vst.msk [vmem:[%s1390_s27 + $0x240] sm:$0xff] %vm1046_vm1, %v990_v27 }
 0x146   : > { %1130 = vst.msk [vmem:[%s1390_s27 + $0x298] sm:$0xff] %vm1046_vm1, %v1001_v32  ;;  %v243_v32 = vld [vmem:[%s1379_s24 + $0x2f0] sm:$0xff] }
 0x148   : > { %769 = vrot.lane.b32.xlu1 %v395_v29, %s1263_s19  ;;  %767 = vrot.lane.b32.xlu0 %v394_v30, %s1263_s19  ;;  %v250_v29 = vld [vmem:[%s1379_s24 + $0x328] sm:$0xff] }
 0x149   : > { %771 = vrot.lane.b32.xlu2 %v396_v35, %s1263_s19 }
 0x14a   : > { %v686_v36 = vpop.permute.xlu1 %685  ;;  %v684_v37 = vpop.permute.xlu0 %683 }
 0x14b   : > { %v994_v38 = vsel %vm917_vm0, %v225_v33, %v686_v36  ;;  %v993_v39 = vsel %vm917_vm0, %v224_v34, %v684_v37  ;;  %v706_v43 = vpop.permute.xlu2 %705  ;;  %v242_v33 = vld [vmem:[%s1379_s24 + $0x2e8] sm:$0xff] }
 0x14c   : > { %1123 = vst.msk [vmem:[%s1390_s27 + $0x260] sm:$0xff] %vm1046_vm1, %v994_v38  ;;  %v1004_v44 = vsel %vm917_vm0, %v235_v40, %v706_v43  ;;  %v253_v38 = vld [vmem:[%s1379_s24 + $0x340] sm:$0xff] }
 0x14d   : > { %1122 = vst.msk [vmem:[%s1390_s27 + $0x258] sm:$0xff] %vm1046_vm1, %v993_v39 }
 0x14e   : > { %1133 = vst.msk [vmem:[%s1390_s27 + $0x2b0] sm:$0xff] %vm1046_vm1, %v1004_v44 }
 0x150   : > { %775 = vrot.lane.b32.xlu1 %v398_v41, %s1263_s19  ;;  %773 = vrot.lane.b32.xlu0 %v397_v42, %s1263_s19  ;;  %v246_v41 = vld [vmem:[%s1379_s24 + $0x308] sm:$0xff]  ;;  %v245_v42 = vld [vmem:[%s1379_s24 + $0x300] sm:$0xff] }
 0x151   : > { %777 = vrot.lane.b32.xlu2 %v399_v47, %s1263_s19  ;;  %v256_v47 = vld [vmem:[%s1379_s24 + $0x358] sm:$0xff] }
 0x152   : > { %v692_v48 = vpop.permute.xlu1 %691  ;;  %v690_v49 = vpop.permute.xlu0 %689 }
 0x153   : > { %v997_v50 = vsel %vm917_vm0, %v228_v45, %v692_v48  ;;  %v996_v51 = vsel %vm917_vm0, %v227_v46, %v690_v49  ;;  %v712_v55 = vpop.permute.xlu2 %711 }
 0x154   : > { %1126 = vst.msk [vmem:[%s1390_s27 + $0x278] sm:$0xff] %vm1046_vm1, %v997_v50  ;;  %v1007_v56 = vsel %vm917_vm0, %v238_v52, %v712_v55  ;;  %v249_v50 = vld [vmem:[%s1379_s24 + $0x320] sm:$0xff] }
 0x155   : > { %1125 = vst.msk [vmem:[%s1390_s27 + $0x270] sm:$0xff] %vm1046_vm1, %v996_v51  ;;  %v248_v51 = vld [vmem:[%s1379_s24 + $0x318] sm:$0xff] }
 0x156   : > { %1136 = vst.msk [vmem:[%s1390_s27 + $0x2c8] sm:$0xff] %vm1046_vm1, %v1007_v56  ;;  %v259_v56 = vld [vmem:[%s1379_s24 + $0x370] sm:$0xff] }
 0x158   : > { %781 = vrot.lane.b32.xlu1 %v401_v53, %s1263_s19  ;;  %779 = vrot.lane.b32.xlu0 %v400_v54, %s1263_s19 }
 0x159   : > { %783 = vrot.lane.b32.xlu2 %v402_v59, %s1263_s19  ;;  %v252_v59 = vld [vmem:[%s1379_s24 + $0x338] sm:$0xff] }
 0x15a   : > { %v698_v60 = vpop.permute.xlu1 %697  ;;  %v696_v61 = vpop.permute.xlu0 %695 }
 0x15b   : > { %v1000_v62 = vsel %vm917_vm0, %v231_v57, %v698_v60  ;;  %v999_v63 = vsel %vm917_vm0, %v230_v58, %v696_v61  ;;  %v718_v3 = vpop.permute.xlu2 %717  ;;  %v251_v60 = vld [vmem:[%s1379_s24 + $0x330] sm:$0xff] }
 0x15c   : > { %1129 = vst.msk [vmem:[%s1390_s27 + $0x290] sm:$0xff] %vm1046_vm1, %v1000_v62  ;;  %v1010_v4 = vsel %vm917_vm0, %v241_v0, %v718_v3 }
 0x15d   : > { %1128 = vst.msk [vmem:[%s1390_s27 + $0x288] sm:$0xff] %vm1046_vm1, %v999_v63 }
 0x15e   : > { %1139 = vst.msk [vmem:[%s1390_s27 + $0x2e0] sm:$0xff] %vm1046_vm1, %v1010_v4  ;;  %v255_v4 = vld [vmem:[%s1379_s24 + $0x350] sm:$0xff] }
 0x160   : > { %787 = vrot.lane.b32.xlu1 %v404_v1, %s1263_s19  ;;  %785 = vrot.lane.b32.xlu0 %v403_v2, %s1263_s19  ;;  %v262_v1 = vld [vmem:[%s1379_s24 + $0x388] sm:$0xff] }
 0x162   : > { %v704_v7 = vpop.permute.xlu1 %703  ;;  %v702_v8 = vpop.permute.xlu0 %701 }
 0x163   : > { %v1003_v9 = vsel %vm917_vm0, %v234_v5, %v704_v7  ;;  %v1002_v10 = vsel %vm917_vm0, %v233_v6, %v702_v8  ;;  %v724_v12 = vpop.permute.xlu2 %723  ;;  %v254_v5 = vld [vmem:[%s1379_s24 + $0x348] sm:$0xff] }
 0x164   : > { %1132 = vst.msk [vmem:[%s1390_s27 + $0x2a8] sm:$0xff] %vm1046_vm1, %v1003_v9  ;;  %v1013_v13 = vsel %vm917_vm0, %v244_v11, %v724_v12 }
 0x165   : > { %1131 = vst.msk [vmem:[%s1390_s27 + $0x2a0] sm:$0xff] %vm1046_vm1, %v1002_v10  ;;  %v265_v10 = vld [vmem:[%s1379_s24 + $0x3a0] sm:$0xff] }
 0x166   : > { %1142 = vst.msk [vmem:[%s1390_s27 + $0x2f8] sm:$0xff] %vm1046_vm1, %v1013_v13  ;;  %v258_v13 = vld [vmem:[%s1379_s24 + $0x368] sm:$0xff] }
 0x16a   : > { %v710_v16 = vpop.permute.xlu1 %709  ;;  %v708_v17 = vpop.permute.xlu0 %707 }
 0x16b   : > { %v1006_v18 = vsel %vm917_vm0, %v237_v14, %v710_v16  ;;  %v1005_v19 = vsel %vm917_vm0, %v236_v15, %v708_v17  ;;  %v730_v21 = vpop.permute.xlu2 %729  ;;  %v257_v14 = vld [vmem:[%s1379_s24 + $0x360] sm:$0xff] }
 0x16c   : > { %1135 = vst.msk [vmem:[%s1390_s27 + $0x2c0] sm:$0xff] %vm1046_vm1, %v1006_v18  ;;  %v1016_v22 = vsel %vm917_vm0, %v247_v20, %v730_v21 }
 0x16d   : > { %1134 = vst.msk [vmem:[%s1390_s27 + $0x2b8] sm:$0xff] %vm1046_vm1, %v1005_v19  ;;  %v268_v19 = vld [vmem:[%s1379_s24 + $0x3b8] sm:$0xff] }
 0x16e   : > { %1145 = vst.msk [vmem:[%s1390_s27 + $0x310] sm:$0xff] %vm1046_vm1, %v1016_v22  ;;  %v261_v22 = vld [vmem:[%s1379_s24 + $0x380] sm:$0xff] }
 0x172   : > { %v716_v25 = vpop.permute.xlu1 %715  ;;  %v714_v26 = vpop.permute.xlu0 %713 }
 0x173   : > { %v1009_v27 = vsel %vm917_vm0, %v240_v23, %v716_v25  ;;  %v1008_v28 = vsel %vm917_vm0, %v239_v24, %v714_v26  ;;  %v736_v30 = vpop.permute.xlu2 %735  ;;  %v260_v23 = vld [vmem:[%s1379_s24 + $0x378] sm:$0xff] }
 0x174   : > { %1138 = vst.msk [vmem:[%s1390_s27 + $0x2d8] sm:$0xff] %vm1046_vm1, %v1009_v27  ;;  %v1019_v31 = vsel %vm917_vm0, %v250_v29, %v736_v30 }
 0x175   : > { %1137 = vst.msk [vmem:[%s1390_s27 + $0x2d0] sm:$0xff] %vm1046_vm1, %v1008_v28  ;;  %v271_v28 = vld [vmem:[%s1379_s24 + $0x3d0] sm:$0xff] }
 0x176   : > { %1148 = vst.msk [vmem:[%s1390_s27 + $0x328] sm:$0xff] %vm1046_vm1, %v1019_v31  ;;  %v264_v31 = vld [vmem:[%s1379_s24 + $0x398] sm:$0xff] }
 0x17a   : > { %v722_v34 = vpop.permute.xlu1 %721  ;;  %v720_v35 = vpop.permute.xlu0 %719 }
 0x17b   : > { %v1012_v36 = vsel %vm917_vm0, %v243_v32, %v722_v34  ;;  %v1011_v37 = vsel %vm917_vm0, %v242_v33, %v720_v35  ;;  %v742_v39 = vpop.permute.xlu2 %741  ;;  %v263_v32 = vld [vmem:[%s1379_s24 + $0x390] sm:$0xff] }
 0x17c   : > { %1141 = vst.msk [vmem:[%s1390_s27 + $0x2f0] sm:$0xff] %vm1046_vm1, %v1012_v36  ;;  %v1022_v40 = vsel %vm917_vm0, %v253_v38, %v742_v39 }
 0x17d   : > { %1140 = vst.msk [vmem:[%s1390_s27 + $0x2e8] sm:$0xff] %vm1046_vm1, %v1011_v37  ;;  %v274_v37 = vld [vmem:[%s1379_s24 + $0x3e8] sm:$0xff] }
 0x17e   : > { %1151 = vst.msk [vmem:[%s1390_s27 + $0x340] sm:$0xff] %vm1046_vm1, %v1022_v40  ;;  %v267_v40 = vld [vmem:[%s1379_s24 + $0x3b0] sm:$0xff] }
 0x182   : > { %v728_v43 = vpop.permute.xlu1 %727  ;;  %v726_v44 = vpop.permute.xlu0 %725 }
 0x183   : > { %v1015_v45 = vsel %vm917_vm0, %v246_v41, %v728_v43  ;;  %v1014_v46 = vsel %vm917_vm0, %v245_v42, %v726_v44  ;;  %v748_v48 = vpop.permute.xlu2 %747  ;;  %v266_v41 = vld [vmem:[%s1379_s24 + $0x3a8] sm:$0xff] }
 0x184   : > { %1144 = vst.msk [vmem:[%s1390_s27 + $0x308] sm:$0xff] %vm1046_vm1, %v1015_v45  ;;  %v1025_v49 = vsel %vm917_vm0, %v256_v47, %v748_v48  ;;  %v269_v47 = vld [vmem:[%s1379_s24 + $0x3c0] sm:$0xff] }
 0x185   : > { %1143 = vst.msk [vmem:[%s1390_s27 + $0x300] sm:$0xff] %vm1046_vm1, %v1014_v46  ;;  %v270_v46 = vld [vmem:[%s1379_s24 + $0x3c8] sm:$0xff] }
 0x186   : > { %1154 = vst.msk [vmem:[%s1390_s27 + $0x358] sm:$0xff] %vm1046_vm1, %v1025_v49 }
 0x18a   : > { %v734_v52 = vpop.permute.xlu1 %733  ;;  %v732_v53 = vpop.permute.xlu0 %731 }
 0x18b   : > { %v1018_v54 = vsel %vm917_vm0, %v249_v50, %v734_v52  ;;  %v1017_v55 = vsel %vm917_vm0, %v248_v51, %v732_v53  ;;  %v754_v57 = vpop.permute.xlu2 %753  ;;  %v273_v52 = vld [vmem:[%s1379_s24 + $0x3e0] sm:$0xff]  ;;  %v272_v53 = vld [vmem:[%s1379_s24 + $0x3d8] sm:$0xff] }
 0x18c   : > { %1147 = vst.msk [vmem:[%s1390_s27 + $0x320] sm:$0xff] %vm1046_vm1, %v1018_v54  ;;  %v1028_v58 = vsel %vm917_vm0, %v259_v56, %v754_v57 }
 0x18d   : > { %1146 = vst.msk [vmem:[%s1390_s27 + $0x318] sm:$0xff] %vm1046_vm1, %v1017_v55 }
 0x18e   : > { %1157 = vst.msk [vmem:[%s1390_s27 + $0x370] sm:$0xff] %vm1046_vm1, %v1028_v58  ;;  %v276_v58 = vld [vmem:[%s1379_s24 + $0x3f8] sm:$0xff] }
 0x192   : > { %v740_v61 = vpop.permute.xlu1 %739  ;;  %v738_v62 = vpop.permute.xlu0 %737 }
 0x193   : > { %v1021_v63 = vsel %vm917_vm0, %v252_v59, %v740_v61  ;;  %v1020_v0 = vsel %vm917_vm0, %v251_v60, %v738_v62  ;;  %v760_v2 = vpop.permute.xlu2 %759  ;;  %v275_v59 = vld [vmem:[%s1379_s24 + $0x3f0] sm:$0xff] }
 0x194   : > { %1150 = vst.msk [vmem:[%s1390_s27 + $0x338] sm:$0xff] %vm1046_vm1, %v1021_v63  ;;  %v1031_v3 = vsel %vm917_vm0, %v262_v1, %v760_v2 }
 0x195   : > { %1149 = vst.msk [vmem:[%s1390_s27 + $0x330] sm:$0xff] %vm1046_vm1, %v1020_v0 }
 0x196   : > { %1160 = vst.msk [vmem:[%s1390_s27 + $0x388] sm:$0xff] %vm1046_vm1, %v1031_v3 }
 0x19a   : > { %v746_v6 = vpop.permute.xlu1 %745  ;;  %v744_v7 = vpop.permute.xlu0 %743 }
 0x19b   : > { %v1024_v8 = vsel %vm917_vm0, %v255_v4, %v746_v6  ;;  %v1023_v9 = vsel %vm917_vm0, %v254_v5, %v744_v7  ;;  %v766_v11 = vpop.permute.xlu2 %765 }
 0x19c   : > { %1153 = vst.msk [vmem:[%s1390_s27 + $0x350] sm:$0xff] %vm1046_vm1, %v1024_v8  ;;  %v1034_v12 = vsel %vm917_vm0, %v265_v10, %v766_v11 }
 0x19d   : > { %1152 = vst.msk [vmem:[%s1390_s27 + $0x348] sm:$0xff] %vm1046_vm1, %v1023_v9 }
 0x19e   : > { %1163 = vst.msk [vmem:[%s1390_s27 + $0x3a0] sm:$0xff] %vm1046_vm1, %v1034_v12 }
 0x1a2   : > { %v752_v15 = vpop.permute.xlu1 %751  ;;  %v750_v16 = vpop.permute.xlu0 %749 }
 0x1a3   : > { %v1027_v17 = vsel %vm917_vm0, %v258_v13, %v752_v15  ;;  %v1026_v18 = vsel %vm917_vm0, %v257_v14, %v750_v16  ;;  %v772_v20 = vpop.permute.xlu2 %771 }
 0x1a4   : > { %1156 = vst.msk [vmem:[%s1390_s27 + $0x368] sm:$0xff] %vm1046_vm1, %v1027_v17  ;;  %v1037_v21 = vsel %vm917_vm0, %v268_v19, %v772_v20 }
 0x1a5   : > { %1155 = vst.msk [vmem:[%s1390_s27 + $0x360] sm:$0xff] %vm1046_vm1, %v1026_v18 }
 0x1a6   : > { %1166 = vst.msk [vmem:[%s1390_s27 + $0x3b8] sm:$0xff] %vm1046_vm1, %v1037_v21 }
 0x1aa   : > { %v758_v24 = vpop.permute.xlu1 %757  ;;  %v756_v25 = vpop.permute.xlu0 %755 }
 0x1ab   : > { %v1030_v26 = vsel %vm917_vm0, %v261_v22, %v758_v24  ;;  %v1029_v27 = vsel %vm917_vm0, %v260_v23, %v756_v25  ;;  %v778_v29 = vpop.permute.xlu2 %777 }
 0x1ac   : > { %1159 = vst.msk [vmem:[%s1390_s27 + $0x380] sm:$0xff] %vm1046_vm1, %v1030_v26  ;;  %v1040_v30 = vsel %vm917_vm0, %v271_v28, %v778_v29 }
 0x1ad   : > { %1158 = vst.msk [vmem:[%s1390_s27 + $0x378] sm:$0xff] %vm1046_vm1, %v1029_v27 }
 0x1ae   : > { %1169 = vst.msk [vmem:[%s1390_s27 + $0x3d0] sm:$0xff] %vm1046_vm1, %v1040_v30 }
 0x1b2   : > { %v764_v33 = vpop.permute.xlu1 %763  ;;  %v762_v34 = vpop.permute.xlu0 %761 }
 0x1b3   : > { %v1033_v35 = vsel %vm917_vm0, %v264_v31, %v764_v33  ;;  %v1032_v36 = vsel %vm917_vm0, %v263_v32, %v762_v34  ;;  %v784_v38 = vpop.permute.xlu2 %783 }
 0x1b4   : > { %1162 = vst.msk [vmem:[%s1390_s27 + $0x398] sm:$0xff] %vm1046_vm1, %v1033_v35  ;;  %v1043_v39 = vsel %vm917_vm0, %v274_v37, %v784_v38 }
 0x1b5   : > { %1161 = vst.msk [vmem:[%s1390_s27 + $0x390] sm:$0xff] %vm1046_vm1, %v1032_v36 }
 0x1b6   : > { %1172 = vst.msk [vmem:[%s1390_s27 + $0x3e8] sm:$0xff] %vm1046_vm1, %v1043_v39 }
 0x1ba   : > { %v770_v42 = vpop.permute.xlu1 %769  ;;  %v768_v43 = vpop.permute.xlu0 %767 }
 0x1bb   : > { %v1036_v44 = vsel %vm917_vm0, %v267_v40, %v770_v42  ;;  %v1035_v45 = vsel %vm917_vm0, %v266_v41, %v768_v43 }
 0x1bc   : > { %1165 = vst.msk [vmem:[%s1390_s27 + $0x3b0] sm:$0xff] %vm1046_vm1, %v1036_v44 }
 0x1bd   : > { %1164 = vst.msk [vmem:[%s1390_s27 + $0x3a8] sm:$0xff] %vm1046_vm1, %v1035_v45 }
 0x1c2   : > { %v776_v48 = vpop.permute.xlu1 %775  ;;  %v774_v49 = vpop.permute.xlu0 %773 }
 0x1c3   : > { %v1039_v50 = vsel %vm917_vm0, %v270_v46, %v776_v48  ;;  %v1038_v51 = vsel %vm917_vm0, %v269_v47, %v774_v49 }
 0x1c4   : > { %1168 = vst.msk [vmem:[%s1390_s27 + $0x3c8] sm:$0xff] %vm1046_vm1, %v1039_v50 }
 0x1c5   : > { %1167 = vst.msk [vmem:[%s1390_s27 + $0x3c0] sm:$0xff] %vm1046_vm1, %v1038_v51 }
 0x1ca   : > { %v782_v54 = vpop.permute.xlu1 %781  ;;  %v780_v55 = vpop.permute.xlu0 %779 }
 0x1cb   : > { %v1042_v56 = vsel %vm917_vm0, %v273_v52, %v782_v54  ;;  %v1041_v57 = vsel %vm917_vm0, %v272_v53, %v780_v55 }
 0x1cc   : > { %1171 = vst.msk [vmem:[%s1390_s27 + $0x3e0] sm:$0xff] %vm1046_vm1, %v1042_v56 }
 0x1cd   : > { %1170 = vst.msk [vmem:[%s1390_s27 + $0x3d8] sm:$0xff] %vm1046_vm1, %v1041_v57 }
 0x1d2   : > { %v788_v60 = vpop.permute.xlu1 %787  ;;  %v786_v61 = vpop.permute.xlu0 %785 }
 0x1d3   : > { %v1045_v62 = vsel %vm917_vm0, %v276_v58, %v788_v60  ;;  %v1044_v63 = vsel %vm917_vm0, %v275_v59, %v786_v61 }
 0x1d4   : > { %1174 = vst.msk [vmem:[%s1390_s27 + $0x3f8] sm:$0xff] %vm1046_vm1, %v1045_v62 }
 0x1d5   : > { %1173 = vst.msk [vmem:[%s1390_s27 + $0x3f0] sm:$0xff] %vm1046_vm1, %v1044_v63 }
 0x1d6 PF: > { %s14_s14 = sadd.s32 1, %s1261_s14  }
 0x1d7   : > { %p11_p4 = scmp.ge.s32.totalorder %s14_s14, 4  }
 0x1d9   :  { %13 = sbr.rel (!%p11_p4) target bundleno = 2 (0x2), region = 59 }

</bundles_post_ra>
